<compile_context>
chip_gen: v7x
topology: tpu7x:2x2x1
jax: 0.10.0
libtpu: 0.0.40
codegen_flags: <defaults>
</compile_context>

<pallas_src>
import jax
import jax.numpy as jnp
from jax import lax
from jax.experimental import pallas as pl
from jax.experimental.pallas import tpu as pltpu


def _make_loss_tracker_kernel(n_pad: int, inv_b: float):
    def kernel(w_ref, vals_ref, out_ref, acc_ref):
        k = pl.program_id(0)

        @pl.when(k == 0)
        def _init():
            acc_ref[...] = jnp.zeros_like(acc_ref)

        # Partial row sums for this B-tile.  The cross-lane reduce lands in the
        # XLU slot, which is free filler in a memory-bound kernel.
        vals = vals_ref[...]                                    # (n_pad, tile_b)
        acc_ref[...] += jnp.sum(vals, axis=-1, keepdims=True)   # (n_pad, 1)

        @pl.when(k == pl.num_programs(0) - 1)
        def _finalize():
            row_sum = acc_ref[...]                              # (n_pad, 1)
            unscaled = row_sum * inv_b                          # mean over true B

            # Build the per-loss weight column from SMEM scalars (final step
            # only; n_pad - 1 VPU selects).
            row_idx = lax.broadcasted_iota(jnp.int32, (n_pad, 1), 0)
            w_col = jnp.zeros((n_pad, 1), jnp.float32) + w_ref[0]
            for i in range(1, n_pad):
                w_col = jnp.where(row_idx == i, w_ref[i], w_col)

            scaled = unscaled * w_col                           # (n_pad, 1)
            total = jnp.sum(scaled, axis=0, keepdims=True)      # (1, 1)

            # Single lane-dense slab: col 0 = unscaled, col 1 = scaled,
            # cols >= 2 = total (broadcast).  One unmasked full-width store.
            col_idx = lax.broadcasted_iota(jnp.int32, (n_pad, 128), 1)
            slab = jnp.where(col_idx == 0, unscaled,
                             jnp.where(col_idx == 1, scaled, total))
            out_ref[...] = slab

    return kernel


def loss_tracker_forward(values: jax.Array, weights: jax.Array,
                         *, max_tile_b: int = 2048):
    """values: (N, B) stacked per-loss values; weights: (N,) loss weights."""
    n, b = values.shape
    assert max_tile_b % 128 == 0

    n_pad = ((n + 7) // 8) * 8                       # sublane multiple of 8
    b_lane = ((b + 127) // 128) * 128                # lane multiple of 128
    tile_b = min(max_tile_b, b_lane)
    b_pad = ((b_lane + tile_b - 1) // tile_b) * tile_b
    num_tiles = b_pad // tile_b

    # Zero padding: padded rows give 0 mean / 0 scaled / 0 contribution to the
    # total; padded B columns are compensated by dividing by the true B.
    vals = jnp.pad(values.astype(jnp.float32),
                   ((0, n_pad - n), (0, b_pad - b)))
    w_pad = jnp.pad(weights.astype(jnp.float32), (0, n_pad - n))

    kernel = _make_loss_tracker_kernel(n_pad, 1.0 / float(b))

    out = pl.pallas_call(
        kernel,
        out_shape=jax.ShapeDtypeStruct((n_pad, 128), jnp.float32),
        grid_spec=pltpu.PrefetchScalarGridSpec(
            num_scalar_prefetch=0,
            grid=(num_tiles,),
            in_specs=[
                pl.BlockSpec(memory_space=pltpu.MemorySpace.SMEM),   # weights
                pl.BlockSpec((n_pad, tile_b), lambda k: (0, k)),     # values
            ],
            out_specs=pl.BlockSpec((n_pad, 128), lambda k: (0, 0)),
            scratch_shapes=[pltpu.VMEM((n_pad, 1), jnp.float32)],
        ),
        compiler_params=pltpu.CompilerParams(
            dimension_semantics=("arbitrary",),      # B is a reduction axis
            vmem_limit_bytes=32 * 1024 * 1024,       # safe on v5e/v6e/v7x
        ),
    )(w_pad, vals)

    return {
        "total": out[0, 2],
        "unscaled": out[:n, 0],
        "scaled": out[:n, 1],
    }


if __name__ == "__main__":
    # Case 1: small per-sample losses (4 named losses, 8 values each).
    losses_names = ["bbox", "cls", "giou", "aux"]
    N, B = len(losses_names), 8
    key = jax.random.PRNGKey(0)
    k_vals, k_w, k_vals2 = jax.random.split(key, 3)
    values = jax.random.uniform(k_vals, (N, B), dtype=jnp.float32)
    weights = jnp.linspace(0.5, 2.0, N, dtype=jnp.float32)

    out = loss_tracker_forward(values, weights)
    jax.block_until_ready(out)

    ref_unscaled = jnp.mean(values, axis=-1)
    ref_scaled = ref_unscaled * weights
    ref_total = jnp.sum(ref_scaled)
    assert jnp.allclose(out["unscaled"], ref_unscaled, atol=1e-5)
    assert jnp.allclose(out["scaled"], ref_scaled, atol=1e-5)
    assert jnp.allclose(out["total"], ref_total, atol=1e-5)

    # Case 2: exercises the tiled / pipelined grid path (N=5 -> padded to 8
    # sublane rows, B=2000 -> two 1024-wide tiles with zero padding that must
    # not bias the mean).
    N2, B2 = 5, 2000
    values2 = jax.random.normal(k_vals2, (N2, B2), dtype=jnp.float32)
    weights2 = jnp.linspace(0.25, 1.75, N2, dtype=jnp.float32)

    out2 = loss_tracker_forward(values2, weights2, max_tile_b=1024)
    jax.block_until_ready(out2)

    ref_unscaled2 = jnp.mean(values2, axis=-1)
    ref_scaled2 = ref_unscaled2 * weights2
    ref_total2 = jnp.sum(ref_scaled2)
    assert jnp.allclose(out2["unscaled"], ref_unscaled2, atol=1e-4)
    assert jnp.allclose(out2["scaled"], ref_scaled2, atol=1e-4)
    assert jnp.allclose(out2["total"], ref_total2, atol=1e-4)

    print("KERNEL_OK")
</pallas_src>

<mosaic_0001>
module attributes {stable_mosaic.version = 11 : i64} {
  func.func @kernel(%arg0: i32, %arg1: memref<8xf32, #tpu.memory_space<smem>>, %arg2: memref<8x128xf32, #tpu.memory_space<vmem>>, %arg3: memref<8x128xf32, #tpu.memory_space<vmem>>, %arg4: memref<8x1xf32, #tpu.memory_space<vmem>>) attributes {dimension_semantics = [#tpu.dimension_semantics<arbitrary>], iteration_bounds = array<i64: 1>, scalar_prefetch = 0 : i64, scratch_operands = 1 : i64, tpu.core_type = #tpu.core_type<tc>, window_params = [{transform_indices = @transform_0, window_bounds = array<i64: 8>}, {transform_indices = @transform_1, window_bounds = array<i64: 8, 128>}, {pipeline_mode = #tpu.pipeline_mode<synchronous>, transform_indices = @transform_2, window_bounds = array<i64: 8, 128>}]} {
    %c0_i32 = arith.constant 0 : i32
    %0 = arith.cmpi eq, %arg0, %c0_i32 : i32
    %1 = arith.extui %0 : i1 to i32
    %c0_i32_0 = arith.constant 0 : i32
    %2 = arith.cmpi ne, %1, %c0_i32_0 : i32
    scf.if %2 {
      %cst_8 = arith.constant 0.000000e+00 : f32
      %12 = vector.broadcast %cst_8 : f32 to vector<8x1xf32>
      %c0_9 = arith.constant 0 : index
      %c0_10 = arith.constant 0 : index
      %13 = vector.load %arg4[%c0_9, %c0_10] : memref<8x1xf32, #tpu.memory_space<vmem>>, vector<8x1xf32>
      tpu.vector_store %arg4[%c0_9, %c0_10], %12 {strides = array<i32>} : memref<8x1xf32, #tpu.memory_space<vmem>>, vector<8x1xf32>,
    } else {
    }
    %c0 = arith.constant 0 : index
    %c0_1 = arith.constant 0 : index
    %3 = vector.load %arg2[%c0, %c0_1] : memref<8x128xf32, #tpu.memory_space<vmem>>, vector<8x128xf32>
    %c0_2 = arith.constant 0 : index
    %c0_3 = arith.constant 0 : index
    %4 = vector.load %arg4[%c0_2, %c0_3] : memref<8x1xf32, #tpu.memory_space<vmem>>, vector<8x1xf32>
    %cst = arith.constant dense<0.000000e+00> : vector<8xf32>
    %5 = vector.multi_reduction <add>, %3, %cst [1] : vector<8x128xf32> to vector<8xf32>
    %6 = vector.shape_cast %5 : vector<8xf32> to vector<8x1xf32>
    %7 = arith.addf %4, %6 : vector<8x1xf32>
    %c0_4 = arith.constant 0 : index
    %c0_5 = arith.constant 0 : index
    %8 = vector.load %arg4[%c0_4, %c0_5] : memref<8x1xf32, #tpu.memory_space<vmem>>, vector<8x1xf32>
    tpu.vector_store %arg4[%c0_4, %c0_5], %7 {strides = array<i32>} : memref<8x1xf32, #tpu.memory_space<vmem>>, vector<8x1xf32>,
    %c0_i32_6 = arith.constant 0 : i32
    %9 = arith.cmpi eq, %arg0, %c0_i32_6 : i32
    %10 = arith.extui %9 : i1 to i32
    %c0_i32_7 = arith.constant 0 : i32
    %11 = arith.cmpi ne, %10, %c0_i32_7 : i32
    scf.if %11 {
      %c0_8 = arith.constant 0 : index
      %c0_9 = arith.constant 0 : index
      %12 = vector.load %arg4[%c0_8, %c0_9] : memref<8x1xf32, #tpu.memory_space<vmem>>, vector<8x1xf32>
      %cst_10 = arith.constant 1.250000e-01 : f32
      %13 = vector.broadcast %cst_10 : f32 to vector<8x1xf32>
      %14 = arith.mulf %12, %13 : vector<8x1xf32>
      %15 = tpu.iota {dimensions = array<i32: 0>} : vector<8x1xi32>
      %cst_11 = arith.constant 0.000000e+00 : f32
      %16 = vector.broadcast %cst_11 : f32 to vector<8x1xf32>
      %c0_12 = arith.constant 0 : index
      %17 = memref.load %arg1[%c0_12] : memref<8xf32, #tpu.memory_space<smem>>
      %18 = vector.broadcast %17 : f32 to vector<8x1xf32>
      %19 = arith.addf %16, %18 : vector<8x1xf32>
      %c1_i32 = arith.constant 1 : i32
      %20 = vector.broadcast %c1_i32 : i32 to vector<8x1xi32>
      %21 = arith.cmpi eq, %15, %20 : vector<8x1xi32>
      %c1 = arith.constant 1 : index
      %22 = memref.load %arg1[%c1] : memref<8xf32, #tpu.memory_space<smem>>
      %23 = vector.broadcast %22 : f32 to vector<8x1xf32>
      %24 = arith.select %21, %23, %19 : vector<8x1xi1>, vector<8x1xf32>
      %c2_i32 = arith.constant 2 : i32
      %25 = vector.broadcast %c2_i32 : i32 to vector<8x1xi32>
      %26 = arith.cmpi eq, %15, %25 : vector<8x1xi32>
      %c2 = arith.constant 2 : index
      %27 = memref.load %arg1[%c2] : memref<8xf32, #tpu.memory_space<smem>>
      %28 = vector.broadcast %27 : f32 to vector<8x1xf32>
      %29 = arith.select %26, %28, %24 : vector<8x1xi1>, vector<8x1xf32>
      %c3_i32 = arith.constant 3 : i32
      %30 = vector.broadcast %c3_i32 : i32 to vector<8x1xi32>
      %31 = arith.cmpi eq, %15, %30 : vector<8x1xi32>
      %c3 = arith.constant 3 : index
      %32 = memref.load %arg1[%c3] : memref<8xf32, #tpu.memory_space<smem>>
      %33 = vector.broadcast %32 : f32 to vector<8x1xf32>
      %34 = arith.select %31, %33, %29 : vector<8x1xi1>, vector<8x1xf32>
      %c4_i32 = arith.constant 4 : i32
      %35 = vector.broadcast %c4_i32 : i32 to vector<8x1xi32>
      %36 = arith.cmpi eq, %15, %35 : vector<8x1xi32>
      %c4 = arith.constant 4 : index
      %37 = memref.load %arg1[%c4] : memref<8xf32, #tpu.memory_space<smem>>
      %38 = vector.broadcast %37 : f32 to vector<8x1xf32>
      %39 = arith.select %36, %38, %34 : vector<8x1xi1>, vector<8x1xf32>
      %c5_i32 = arith.constant 5 : i32
      %40 = vector.broadcast %c5_i32 : i32 to vector<8x1xi32>
      %41 = arith.cmpi eq, %15, %40 : vector<8x1xi32>
      %c5 = arith.constant 5 : index
      %42 = memref.load %arg1[%c5] : memref<8xf32, #tpu.memory_space<smem>>
      %43 = vector.broadcast %42 : f32 to vector<8x1xf32>
      %44 = arith.select %41, %43, %39 : vector<8x1xi1>, vector<8x1xf32>
      %c6_i32 = arith.constant 6 : i32
      %45 = vector.broadcast %c6_i32 : i32 to vector<8x1xi32>
      %46 = arith.cmpi eq, %15, %45 : vector<8x1xi32>
      %c6 = arith.constant 6 : index
      %47 = memref.load %arg1[%c6] : memref<8xf32, #tpu.memory_space<smem>>
      %48 = vector.broadcast %47 : f32 to vector<8x1xf32>
      %49 = arith.select %46, %48, %44 : vector<8x1xi1>, vector<8x1xf32>
      %c7_i32 = arith.constant 7 : i32
      %50 = vector.broadcast %c7_i32 : i32 to vector<8x1xi32>
      %51 = arith.cmpi eq, %15, %50 : vector<8x1xi32>
      %c7 = arith.constant 7 : index
      %52 = memref.load %arg1[%c7] : memref<8xf32, #tpu.memory_space<smem>>
      %53 = vector.broadcast %52 : f32 to vector<8x1xf32>
      %54 = arith.select %51, %53, %49 : vector<8x1xi1>, vector<8x1xf32>
      %55 = arith.mulf %14, %54 : vector<8x1xf32>
      %cst_13 = arith.constant dense<0.000000e+00> : vector<1xf32>
      %56 = vector.multi_reduction <add>, %55, %cst_13 [0] : vector<8x1xf32> to vector<1xf32>
      %57 = vector.shape_cast %56 : vector<1xf32> to vector<1x1xf32>
      %58 = tpu.iota {dimensions = array<i32: 1>} : vector<8x128xi32>
      %c0_i32_14 = arith.constant 0 : i32
      %59 = vector.broadcast %c0_i32_14 : i32 to vector<8x128xi32>
      %60 = arith.cmpi eq, %58, %59 : vector<8x128xi32>
      %c1_i32_15 = arith.constant 1 : i32
      %61 = vector.broadcast %c1_i32_15 : i32 to vector<8x128xi32>
      %62 = arith.cmpi eq, %58, %61 : vector<8x128xi32>
      %63 = vector.shape_cast %55 : vector<8x1xf32> to vector<8x1xf32>
      %64 = vector.broadcast %63 : vector<8x1xf32> to vector<8x128xf32>
      %65 = vector.shape_cast %57 : vector<1x1xf32> to vector<1x1xf32>
      %66 = vector.broadcast %65 : vector<1x1xf32> to vector<8x128xf32>
      %67 = arith.select %62, %64, %66 : vector<8x128xi1>, vector<8x128xf32>
      %68 = vector.shape_cast %14 : vector<8x1xf32> to vector<8x1xf32>
      %69 = vector.broadcast %68 : vector<8x1xf32> to vector<8x128xf32>
      %70 = arith.select %60, %69, %67 : vector<8x128xi1>, vector<8x128xf32>
      %c0_16 = arith.constant 0 : index
      %c0_17 = arith.constant 0 : index
      %71 = vector.load %arg3[%c0_16, %c0_17] : memref<8x128xf32, #tpu.memory_space<vmem>>, vector<8x128xf32>
      tpu.vector_store %arg3[%c0_16, %c0_17], %70 {strides = array<i32>} : memref<8x128xf32, #tpu.memory_space<vmem>>, vector<8x128xf32>,
    } else {
    }
    return
  }
  func.func @transform_0(%arg0: i32) -> i32 {
    %c0_i32 = arith.constant 0 : i32
    %c0_i32_0 = arith.constant 0 : i32
    return %c0_i32 : i32
  }
  func.func @transform_1(%arg0: i32) -> (i32, i32) {
    %c0_i32 = arith.constant 0 : i32
    %c0_i32_0 = arith.constant 0 : i32
    return %c0_i32, %arg0 : i32, i32
  }
  func.func @transform_2(%arg0: i32) -> (i32, i32) {
    %c0_i32 = arith.constant 0 : i32
    %c0_i32_0 = arith.constant 0 : i32
    %c0_i32_1 = arith.constant 0 : i32
    return %c0_i32, %c0_i32_0 : i32, i32
  }
}

</mosaic_0001>

<bundles_post_ra>
// kernel: tpu_custom_call.1
= control target key start
LH: loop header
LB: loop body
LE: loop exit
PB: predicated region body
PF: predicated region fallthrough
CT: control target
= control target key end

     0   :  { %7 = vsyncpa [#allocation6], 0  ;;  %s265_s0 = inlined_call_operand.hbm [shape: f32[8], index: 0, kind: input, shape index: {}]   ;;  %s266_s1 = inlined_call_operand.hbm [shape: f32[8,128], index: 1, kind: input, shape index: {}]   ;;  %s267_s2 = inlined_call_operand.hbm [shape: f32[8,128], index: 2, kind: output, shape index: {}]  }
   0x1   :  { %8 = vsyncpa [#allocation4], 0 }
   0x2   :  { %9 = vsyncpa [#allocation5], 0  ;;  %s146_s11 = scalar_lea.hbm %s265_s0, 16 }
   0x3   :  { %p147_p0 = scmp.ne.s32.totalorder %s265_s0, %s146_s11  ;;  %p150_p1 = scmp.lt.u32.totalorder %s146_s11, %s265_s0 }
   0x5   :  { %p152_p2 = pnand %p150_p1, %p147_p0 }
   0x7   :  { %155 = shalt.err (!%p152_p2)
}
   0x8   :  { %s206_s16 = smov [#allocation3]   ;;  %s207_s19 = smov [#allocation7]  }
   0x9   :  { %17 = dma.hbm_to_smem %s265_s0, 16, %s206_s16, [#allocation6]  }
   0xa   :  { %s24_s20 = sshll.u32 %s207_s19, 4  ;;  %s156_s23 = scalar_lea.hbm %s266_s1, 128  ;;  %s25_s20 = int_to_ptr.vmem [resolvable:$true] %s24_s20 }
   0xb   :  { %p157_p3 = scmp.ne.s32.totalorder %s266_s1, %s156_s23  ;;  %p160_p4 = scmp.lt.u32.totalorder %s156_s23, %s266_s1 }
   0xd   :  { %p162_p5 = pnand %p160_p4, %p157_p3 }
   0xf   :  { %165 = shalt.err (!%p162_p5)
}
  0x10   :  { %s166_s28 = scalar_lea.vmem %s25_s20, 128  ;;  %p171_p7 = scmp.lt.s32.totalorder %s25_s20, %s25_s20 }
  0x11   :  { %p167_p6 = scmp.ne.s32.totalorder %s25_s20, %s166_s28  ;;  %p172_p8 = scmp.lt.s32.totalorder %s166_s28, %s166_s28 }
  0x13   :  { %p173_p9 = por %p172_p8, %p171_p7 }
  0x15   :  { %p174_p10 = pnand %p173_p9, %p167_p6 }
  0x17   :  { %177 = shalt.err (!%p174_p10)
}
  0x18   :  { %27 = dma.hbm_to_vmem [thread:$0]  %s266_s1, 128, %s25_s20, [#allocation4]  }
  0x19   :  { %200 = dma.done.wait [#allocation6], 16  }
  0x1a   :  { %201 = vsyncadd [#allocation6], 4294967280 }
  0x1b   :  { %202 = dma.done.wait [#allocation4], 128  }
  0x1c   :  { %203 = vsyncadd [#allocation4], 4294967168 }
  0x1d   :  { %34 = sfence }
  0x1e   :  { %v41_v0 = vld [vmem:[#allocation7] sm:$0xff]  ;;  %vm39_vm0 = vcmask 7168   ;;  %v208_v1 = vmov 0.0   ;;  %v209_v2 = vmov 0   ;;  %v53_v3 = vlaneseq  ;;  %s55_s30 = sld [smem:[#allocation3]]  ;;  %s132_s3 = sld [smem:[#allocation3 + $0x1]] }
  0x1f   :  { %43 = vadd.xlane.f32.xlu0 %v41_v0  ;;  %40 = vst.msk [vmem:[#allocation2] sm:$0xff] %vm39_vm0, %v208_v1  ;;  %145 = vset.pattern.permute.xlu1 %v209_v2  ;;  %s133_s4 = sld [smem:[#allocation3 + $0x2]]  ;;  %s134_s1 = sld [smem:[#allocation3 + $0x3]] }
  0x20   :  { %144 = vset.pattern.permute.xlu0 %v209_v2  ;;  %v54_v4 = vshrl.u32 %v53_v3, 7  ;;  %s135_s5 = sld [smem:[#allocation3 + $0x4]]  ;;  %s136_s6 = sld [smem:[#allocation3 + $0x5]]  ;;  %v95_v33 = vand.u32 127, %v53_v3 }
  0x21   :  { %s137_s7 = sld [smem:[#allocation3 + $0x6]]  ;;  %s138_s8 = sld [smem:[#allocation3 + $0x7]] }
  0x22   :  { %vm58_vm1 = vcmp.eq.s32.totalorder %v54_v4, 1  ;;  %vm62_vm2 = vcmp.eq.s32.totalorder %v54_v4, 2  ;;  %vm66_vm3 = vcmp.eq.s32.totalorder %v54_v4, 3  ;;  %vm70_vm4 = vcmp.eq.s32.totalorder %v54_v4, 4  ;;  %s210_s9 = smov [#allocation8]  }
  0x23   :  { %vm74_vm5 = vcmp.eq.s32.totalorder %v54_v4, 5  ;;  %vm78_vm6 = vcmp.eq.s32.totalorder %v54_v4, 6  ;;  %vm82_vm7 = vcmp.eq.s32.totalorder %v54_v4, 7  ;;  %vm97_vm8 = vcmp.eq.s32.totalorder %v95_v33, 1  ;;  %s122_s10 = sshll.u32 %s210_s9, 4  ;;  %s123_s10 = int_to_ptr.vmem [resolvable:$true] %s122_s10 }
  0x24   :  { %v56_v5 = vstv %s55_s30  ;;  %v60_v6 = vstv %s132_s3  ;;  %vm96_vm9 = vcmp.eq.s32.totalorder %v95_v33, 0  ;;  %s178_s11 = scalar_lea.vmem %s123_s10, 128  ;;  %p183_p12 = scmp.lt.s32.totalorder %s123_s10, %s123_s10 }
  0x25   :  { %v61_v7 = vsel %vm58_vm1, %v60_v6, %v56_v5  ;;  %v64_v8 = vstv %s133_s4  ;;  %v68_v10 = vstv %s134_s1  ;;  %p179_p11 = scmp.ne.s32.totalorder %s123_s10, %s178_s11  ;;  %p184_p13 = scmp.lt.s32.totalorder %s178_s11, %s178_s11 }
  0x26   :  { %v65_v9 = vsel %vm62_vm2, %v64_v8, %v61_v7  ;;  %v42_v11 = vld [vmem:[#allocation2] sm:$0xff]  ;;  %v72_v13 = vstv %s135_s5  ;;  %v76_v17 = vstv %s136_s6 }
  0x27   :  { %v69_v12 = vsel %vm66_vm3, %v68_v10, %v65_v9  ;;  %v80_v19 = vstv %s137_s7  ;;  %v84_v21 = vstv %s138_s8  ;;  %p185_p0 = por %p184_p13, %p183_p12 }
  0x28   :  { %v73_v16 = vsel %vm70_vm4, %v72_v13, %v69_v12 }
  0x29   :  { %v77_v18 = vsel %vm74_vm5, %v76_v17, %v73_v16  ;;  %p186_p1 = pnand %p185_p0, %p179_p11 }
  0x2a   :  { %v81_v20 = vsel %vm78_vm6, %v80_v19, %v77_v18 }
  0x2b   :  { %v85_v23 = vsel %vm82_vm7, %v84_v21, %v81_v20 }
  0xac   :  { %v44_v14 = vpop.xlane.xlu0 %43 }
  0xad   :  { %v45_v15 = vadd.f32 %v44_v14, %v42_v11 }
  0xaf   :  { %47 = vst.msk [vmem:[#allocation2] sm:$0xff] %vm39_vm0, %v45_v15 }
  0xb6   :  { %v51_v22 = vld [vmem:[#allocation2] sm:$0xff] }
  0xb7   :  { %v52_v24 = vmul.f32 0.125, %v51_v22 }
  0xb9   :  { %v86_v25 = vmul.f32 %v85_v23, %v52_v24 }
  0xbb   :  { %100 = vperm.xlu0 %144, %v86_v25   ;;  %v87_v26 = vsel %vm39_vm0, %v86_v25, 0.0 }
  0xbc   :  { %v88_v27 = vrot.slane %v87_v26, 4 }
  0xbe   :  { %v89_v28 = vadd.f32 %v88_v27, %v87_v26 }
  0xc0   :  { %v90_v29 = vrot.slane %v89_v28, 2 }
  0xc2   :  { %v91_v30 = vadd.f32 %v90_v29, %v89_v28 }
  0xc4   :  { %v92_v31 = vrot.slane %v91_v30, 1 }
  0xc6   :  { %v93_v32 = vadd.f32 %v92_v31, %v91_v30 }
  0xc8   :  { %105 = vperm.xlu1 %145, %v93_v32  }
  0xcc   :  { %111 = vperm.xlu1 %145, %v52_v24  }
 0x13a   :  { %v101_v35 = vpop.permute.xlu0 %100 }
 0x147   :  { %v106_v34 = vpop.permute.xlu1 %105 }
 0x148   :  { %v108_v36 = vsel %vm97_vm8, %v101_v35, %v106_v34 }
 0x14b   :  { %v112_v37 = vpop.permute.xlu1 %111 }
 0x14c   :  { %v114_v38 = vsel %vm96_vm9, %v112_v37, %v108_v36 }
 0x14d   :  { %115 = vst [vmem:[#allocation8] sm:$0xff] %v114_v38 }
 0x14e   :  { %189 = shalt.err (!%p186_p1)
}
 0x14f   :  { %s190_s14 = scalar_lea.hbm %s267_s2, 128 }
 0x150   :  { %p191_p2 = scmp.ne.s32.totalorder %s267_s2, %s190_s14  ;;  %p194_p3 = scmp.lt.u32.totalorder %s190_s14, %s267_s2 }
 0x152   :  { %p196_p4 = pnand %p194_p3, %p191_p2 }
 0x154   :  { %199 = shalt.err (!%p196_p4)
}
 0x155   :  { %125 = dma.vmem_to_hbm [thread:$0]  %s123_s10, 128, %s267_s2, [#allocation5]  }
 0x156   :  { %204 = dma.done.wait [#allocation5], 128  }
 0x157   :  { %205 = vsyncadd [#allocation5], 4294967168 }
 0x158   :  { %129 = vsyncpa [#allocation4], 1 }
 0x159   :  { %130 = vsyncpa [#allocation5], 1 }
 0x15a   :  { %131 = vsyncpa [#allocation6], 1 }

</bundles_post_ra>
